<compile_context>
chip_gen: v5e
topology: v5e:2x2
jax: 0.10.0
libtpu: 0.0.40
codegen_flags: <defaults>
</compile_context>

<pallas_src>
import functools

import jax
import jax.numpy as jnp
from jax import lax
from jax.experimental import pallas as pl
from jax.experimental.pallas import tpu as pltpu


def _round_up(a, b):
    return (a + b - 1) // b * b


def _linear_kernel(x_ref, w_ref, b_ref, o_ref, acc_ref):
    """One (tm, tn) output tile; K is the innermost ('arbitrary') grid axis.

    x_ref: (tm, tk)   w_ref: (tn, tk)   b_ref: (1, tn)
    o_ref: (tm, tn)   acc_ref: (tm, tn) f32 scratch
    """
    k = pl.program_id(2)

    @pl.when(k == 0)
    def _init():
        # Fold the bias into the accumulator init -> no extra epilogue pass,
        # and it can never be double-added across K tiles.
        acc_ref[...] = jnp.broadcast_to(
            b_ref[...].astype(jnp.float32), acc_ref.shape
        )

    # MXU matmul: contract x's last dim with W's last dim (i.e. x @ W^T),
    # accumulating in f32 regardless of operand dtype.
    acc_ref[...] += lax.dot_general(
        x_ref[...],
        w_ref[...],
        dimension_numbers=(((1,), (1,)), ((), ())),
        preferred_element_type=jnp.float32,
    )

    @pl.when(k == pl.num_programs(2) - 1)
    def _store():
        o_ref[...] = acc_ref[...].astype(o_ref.dtype)


def _vmem_budget_bytes(tm, tn, tk, in_bytes, out_bytes):
    # BlockSpec double-buffers each input and the output; accumulator is f32.
    buf = 2 * (tm * tk + tn * tk + tn) * in_bytes
    buf += 2 * tm * tn * out_bytes
    buf += tm * tn * 4
    # 1.5x headroom + 1 MiB slack, clamped to a sane range for all chips.
    return int(min(max(int(buf * 1.5) + (1 << 20), 4 << 20), 64 << 20))


@functools.partial(jax.jit, static_argnames=("tm_target", "tn_target", "tk_target"))
def linear_pallas(x, weight, bias, *, tm_target=256, tn_target=256, tk_target=512):
    """y = x @ weight.T + bias  (torch.nn.Linear forward).

    x: (B, IN) float; weight: (WIDTH, IN); bias: (WIDTH,)
    """
    B, IN = x.shape
    WIDTH, IN_w = weight.shape
    assert IN == IN_w

    # --- Tile sizes (MXU / lane aligned), then pad operands to tile multiples.
    tm = min(tm_target, _round_up(B, 8))        # sublane-aligned rows
    tn = min(tn_target, _round_up(WIDTH, 128))  # lane-dense output tiles
    tk = min(tk_target, _round_up(IN, 128))     # 128-deep contraction chunks

    M_pad = _round_up(B, tm)
    N_pad = _round_up(WIDTH, tn)
    K_pad = _round_up(IN, tk)

    # Zero padding is exact: extra K columns contribute 0 to the dot, extra
    # M rows / N columns are sliced off below.  (In a real model the weight /
    # bias would be stored pre-padded once instead of per call.)
    x_p = jnp.pad(x, ((0, M_pad - B), (0, K_pad - IN)))
    w_p = jnp.pad(weight, ((0, N_pad - WIDTH), (0, K_pad - IN)))
    b_p = jnp.pad(bias, (0, N_pad - WIDTH)).reshape(1, N_pad)

    grid = (M_pad // tm, N_pad // tn, K_pad // tk)

    in_bytes = x_p.dtype.itemsize
    out_bytes = x.dtype.itemsize
    vmem_bytes = _vmem_budget_bytes(tm, tn, tk, in_bytes, out_bytes)

    out_padded = pl.pallas_call(
        _linear_kernel,
        out_shape=jax.ShapeDtypeStruct((M_pad, N_pad), x.dtype),
        grid_spec=pltpu.PrefetchScalarGridSpec(
            num_scalar_prefetch=0,
            grid=grid,
            in_specs=[
                pl.BlockSpec((tm, tk), lambda i, j, k: (i, k)),   # x
                pl.BlockSpec((tn, tk), lambda i, j, k: (j, k)),   # W (WIDTH, IN)
                pl.BlockSpec((1, tn), lambda i, j, k: (0, j)),    # bias
            ],
            out_specs=pl.BlockSpec((tm, tn), lambda i, j, k: (i, j)),
            scratch_shapes=[pltpu.VMEM((tm, tn), jnp.float32)],
        ),
        compiler_params=pltpu.CompilerParams(
            dimension_semantics=("parallel", "parallel", "arbitrary"),
            vmem_limit_bytes=vmem_bytes,
        ),
    )(x_p, w_p, b_p)

    return out_padded[:B, :WIDTH]


if __name__ == "__main__":
    # Shapes consistent with the module defaults: Linear(in_features=1 -> width=100).
    B, IN, WIDTH = 8, 1, 100

    key = jax.random.PRNGKey(0)
    kx, kw, kb = jax.random.split(key, 3)

    # Deterministic parameter init (mimics torch.nn.Linear uniform bound).
    bound = 1.0 / jnp.sqrt(jnp.float32(IN))
    weight = jax.random.uniform(kw, (WIDTH, IN), jnp.float32, -bound, bound)
    bias = jax.random.uniform(kb, (WIDTH,), jnp.float32, -bound, bound)
    x = jax.random.normal(kx, (B, IN), jnp.float32)

    y = linear_pallas(x, weight, bias)
    y = jax.block_until_ready(y)

    # Correctness check against the pure-JAX reference of nn.Linear.
    y_ref = x @ weight.T + bias
    assert y.shape == (B, WIDTH)
    assert jnp.allclose(y, y_ref, atol=1e-5, rtol=1e-5), "mismatch vs reference"

    print("KERNEL_OK")
</pallas_src>

<mosaic_0001>
module attributes {stable_mosaic.version = 11 : i64} {
  func.func @_linear_kernel(%arg0: i32, %arg1: i32, %arg2: i32, %arg3: memref<8x128xf32, #tpu.memory_space<vmem>>, %arg4: memref<128x128xf32, #tpu.memory_space<vmem>>, %arg5: memref<1x128xf32, #tpu.memory_space<vmem>>, %arg6: memref<8x128xf32, #tpu.memory_space<vmem>>, %arg7: memref<8x128xf32, #tpu.memory_space<vmem>>) attributes {dimension_semantics = [#tpu.dimension_semantics<parallel>, #tpu.dimension_semantics<parallel>, #tpu.dimension_semantics<arbitrary>], iteration_bounds = array<i64: 1, 1, 1>, scalar_prefetch = 0 : i64, scratch_operands = 1 : i64, tpu.core_type = #tpu.core_type<tc>, window_params = [{transform_indices = @transform_0, window_bounds = array<i64: 8, 128>}, {transform_indices = @transform_1, window_bounds = array<i64: 128, 128>}, {transform_indices = @transform_2, window_bounds = array<i64: 1, 128>}, {transform_indices = @transform_3, window_bounds = array<i64: 8, 128>}]} {
    %c0_i32 = arith.constant 0 : i32
    %0 = arith.cmpi eq, %arg2, %c0_i32 : i32
    %1 = arith.extui %0 : i1 to i32
    %c0_i32_0 = arith.constant 0 : i32
    %2 = arith.cmpi ne, %1, %c0_i32_0 : i32
    scf.if %2 {
      %c0_10 = arith.constant 0 : index
      %c0_11 = arith.constant 0 : index
      %12 = vector.load %arg5[%c0_10, %c0_11] : memref<1x128xf32, #tpu.memory_space<vmem>>, vector<1x128xf32>
      %13 = vector.shape_cast %12 : vector<1x128xf32> to vector<1x128xf32>
      %14 = vector.broadcast %13 : vector<1x128xf32> to vector<8x128xf32>
      %c0_12 = arith.constant 0 : index
      %c0_13 = arith.constant 0 : index
      %15 = vector.load %arg7[%c0_12, %c0_13] : memref<8x128xf32, #tpu.memory_space<vmem>>, vector<8x128xf32>
      tpu.vector_store %arg7[%c0_12, %c0_13], %14 {strides = array<i32>} : memref<8x128xf32, #tpu.memory_space<vmem>>, vector<8x128xf32>,
    } else {
    }
    %c0 = arith.constant 0 : index
    %c0_1 = arith.constant 0 : index
    %3 = vector.load %arg7[%c0, %c0_1] : memref<8x128xf32, #tpu.memory_space<vmem>>, vector<8x128xf32>
    %c0_2 = arith.constant 0 : index
    %c0_3 = arith.constant 0 : index
    %4 = vector.load %arg3[%c0_2, %c0_3] : memref<8x128xf32, #tpu.memory_space<vmem>>, vector<8x128xf32>
    %c0_4 = arith.constant 0 : index
    %c0_5 = arith.constant 0 : index
    %5 = vector.load %arg4[%c0_4, %c0_5] : memref<128x128xf32, #tpu.memory_space<vmem>>, vector<128x128xf32>
    %cst = arith.constant dense<0.000000e+00> : vector<8x128xf32>
    %6 = tpu.matmul %4, %5, %cst {dimension_numbers = #tpu.dot_dimension_numbers<[1], [1], [0], [0], [0, 0, 1, 0], [], []>} : vector<8x128xf32>, vector<128x128xf32>, vector<8x128xf32> -> vector<8x128xf32>
    %7 = arith.addf %3, %6 : vector<8x128xf32>
    %c0_6 = arith.constant 0 : index
    %c0_7 = arith.constant 0 : index
    %8 = vector.load %arg7[%c0_6, %c0_7] : memref<8x128xf32, #tpu.memory_space<vmem>>, vector<8x128xf32>
    tpu.vector_store %arg7[%c0_6, %c0_7], %7 {strides = array<i32>} : memref<8x128xf32, #tpu.memory_space<vmem>>, vector<8x128xf32>,
    %c0_i32_8 = arith.constant 0 : i32
    %9 = arith.cmpi eq, %arg2, %c0_i32_8 : i32
    %10 = arith.extui %9 : i1 to i32
    %c0_i32_9 = arith.constant 0 : i32
    %11 = arith.cmpi ne, %10, %c0_i32_9 : i32
    scf.if %11 {
      %c0_10 = arith.constant 0 : index
      %c0_11 = arith.constant 0 : index
      %12 = vector.load %arg7[%c0_10, %c0_11] : memref<8x128xf32, #tpu.memory_space<vmem>>, vector<8x128xf32>
      %c0_12 = arith.constant 0 : index
      %c0_13 = arith.constant 0 : index
      %13 = vector.load %arg6[%c0_12, %c0_13] : memref<8x128xf32, #tpu.memory_space<vmem>>, vector<8x128xf32>
      tpu.vector_store %arg6[%c0_12, %c0_13], %12 {strides = array<i32>} : memref<8x128xf32, #tpu.memory_space<vmem>>, vector<8x128xf32>,
    } else {
    }
    return
  }
  func.func @transform_0(%arg0: i32, %arg1: i32, %arg2: i32) -> (i32, i32) {
    %c0_i32 = arith.constant 0 : i32
    return %arg0, %arg2 : i32, i32
  }
  func.func @transform_1(%arg0: i32, %arg1: i32, %arg2: i32) -> (i32, i32) {
    %c0_i32 = arith.constant 0 : i32
    return %arg1, %arg2 : i32, i32
  }
  func.func @transform_2(%arg0: i32, %arg1: i32, %arg2: i32) -> (i32, i32) {
    %c0_i32 = arith.constant 0 : i32
    %c0_i32_0 = arith.constant 0 : i32
    return %c0_i32, %arg1 : i32, i32
  }
  func.func @transform_3(%arg0: i32, %arg1: i32, %arg2: i32) -> (i32, i32) {
    %c0_i32 = arith.constant 0 : i32
    return %arg0, %arg1 : i32, i32
  }
}

</mosaic_0001>

<bundles_post_ra>
// kernel: linear_pallas.1
= control target key start
LH: loop header
LB: loop body
LE: loop exit
PB: predicated region body
PF: predicated region fallthrough
CT: control target
= control target key end

     0   :  { %s191_s0 = inlined_call_operand.vmem [shape: f32[8,128], index: 0, kind: input, shape index: {}]   ;;  %s192_s1 = inlined_call_operand.vmem [shape: f32[128,128], index: 1, kind: input, shape index: {}]   ;;  %s193_s2 = inlined_call_operand.vmem [shape: f32[1,128], index: 2, kind: input, shape index: {}]   ;;  %s194_s3 = inlined_call_operand.hbm [shape: f32[8,128], index: 3, kind: output, shape index: {}]  }
   0x1   :  { %v41_v0 = vld [vmem:[%s192_s1 + $0x78] sm:$0xff]  ;;  %v40_v1 = vld [vmem:[%s192_s1 + $0x70] sm:$0xff] }
   0x2   :  { %42 = vmatpush.xpose.msra.mxu0 %v41_v0 }
   0x3   :  { %8 = vsyncpa [#allocation4], 0  ;;  %v39_v2 = vld [vmem:[%s192_s1 + $0x68] sm:$0xff]  ;;  %v38_v3 = vld [vmem:[%s192_s1 + $0x60] sm:$0xff]  ;;  %s113_s21 = smov [#allocation3]   ;;  %s76_s25 = sshll.u32 %s194_s3, 4  ;;  %s77_s25 = int_to_ptr.hbm [resolvable:$true] %s76_s25 }
   0x4   :  { %v37_v4 = vld [vmem:[%s192_s1 + $0x58] sm:$0xff]  ;;  %v36_v5 = vld [vmem:[%s192_s1 + $0x50] sm:$0xff]  ;;  %v35_v6 = vld [vmem:[%s192_s1 + $0x48] sm:$0xff]  ;;  %s74_s22 = sshll.u32 %s113_s21, 4  ;;  %s75_s22 = int_to_ptr.vmem [resolvable:$true] %s74_s22 }
   0x5   :  { %v34_v7 = vld [vmem:[%s192_s1 + $0x40] sm:$0xff]  ;;  %v33_v8 = vld [vmem:[%s192_s1 + $0x38] sm:$0xff]  ;;  %v32_v9 = vld [vmem:[%s192_s1 + $0x30] sm:$0xff] }
   0x6   :  { %43 = vmatpush.xpose.msra.mxu0 %v40_v1  ;;  %v31_v10 = vld [vmem:[%s192_s1 + $0x28] sm:$0xff]  ;;  %v30_v11 = vld [vmem:[%s192_s1 + $0x20] sm:$0xff]  ;;  %v29_v12 = vld [vmem:[%s192_s1 + $0x18] sm:$0xff] }
   0x7   :  { %v28_v13 = vld [vmem:[%s192_s1 + $0x10] sm:$0xff]  ;;  %v27_v14 = vld [vmem:[%s192_s1 + $0x8] sm:$0xff]  ;;  %v26_v15 = vld [vmem:[%s192_s1] sm:$0xff] }
   0x8   :  { %v25_v16 = vld [vmem:[%s191_s0] sm:$0xff] }
   0x9   :  { %v86_v17 = vld [vmem:[%s193_s2] ss:$0 sm:$0xff] }
   0xa   :  { %44 = vmatpush.xpose.msra.mxu0 %v39_v2 }
   0xe   :  { %45 = vmatpush.xpose.msra.mxu0 %v38_v3 }
  0x12   :  { %46 = vmatpush.xpose.msra.mxu0 %v37_v4 }
  0x16   :  { %47 = vmatpush.xpose.msra.mxu0 %v36_v5 }
  0x1a   :  { %48 = vmatpush.xpose.msra.mxu0 %v35_v6 }
  0x1e   :  { %49 = vmatpush.xpose.msra.mxu0 %v34_v7 }
  0x22   :  { %50 = vmatpush.xpose.msra.mxu0 %v33_v8 }
  0x26   :  { %51 = vmatpush.xpose.msra.mxu0 %v32_v9 }
  0x2a   :  { %52 = vmatpush.xpose.msra.mxu0 %v31_v10 }
  0x2e   :  { %53 = vmatpush.xpose.msra.mxu0 %v30_v11 }
  0x32   :  { %54 = vmatpush.xpose.msra.mxu0 %v29_v12 }
  0x36   :  { %55 = vmatpush.xpose.msra.mxu0 %v28_v13 }
  0x3a   :  { %56 = vmatpush.xpose.msra.mxu0 %v27_v14 }
  0x3e   :  { %57 = vmatpush.xpose.msra.mxu0 %v26_v15 }
  0x41   :  { %58 = vmatmul.f32.vlgmr.msra.gmra.mxu0 %v25_v16 }
  0xbe   :  { %v59_v18 = vpop.f32.mrf.mxu0 }
  0xbf   :  { %v62_v19 = vadd.f32 %v86_v17, %v59_v18 }
  0xc1   :  { %68 = vst [vmem:[#allocation3] sm:$0xff] %v62_v19 }
  0xc2   :  { %79 = dma.vmem_to_hbm [thread:$0]  %s75_s22, 128, %s77_s25, [#allocation4]  }
  0xc3   :  { %111 = dma.done.wait [#allocation4], 128  }
  0xc4   :  { %112 = vsyncadd [#allocation4], 4294967168 }
  0xc5   :  { %84 = vsyncpa [#allocation4], 1 }

</bundles_post_ra>
